<compile_context>
chip_gen: v6e
topology: v6e:2x2x1
jax: 0.10.0
libtpu: 0.0.40
codegen_flags: <defaults>
</compile_context>

<pallas_src>
import functools
import math

import jax
import jax.numpy as jnp
from jax.experimental import pallas as pl
from jax.experimental.pallas import tpu as pltpu

EPS = 1e-5  # PyTorch nn.LayerNorm default


def _round_up(a, b):
    return ((a + b - 1) // b) * b


# ---------------------------------------------------------------------------
# AddNorm: LayerNorm(x + sublayer_out)
# ---------------------------------------------------------------------------
def _addnorm_kernel(x_ref, s_ref, gamma_ref, beta_ref, o_ref):
    # x/s/o: (tile_rows, D); gamma/beta: (1, D). Math in f32, HBM dtype preserved.
    y = x_ref[...].astype(jnp.float32) + s_ref[...].astype(jnp.float32)
    inv_d = jnp.float32(1.0 / y.shape[-1])
    # One-pass statistics: two independent cross-lane reductions instead of the
    # dependent mean -> center -> mean(center^2) chain.
    mean = jnp.sum(y, axis=-1, keepdims=True) * inv_d
    mean_sq = jnp.sum(y * y, axis=-1, keepdims=True) * inv_d
    var = mean_sq - mean * mean
    inv_std = jax.lax.rsqrt(var + EPS)
    # Broadcast gamma/beta once per grid step (JAX does not CSE broadcast_in_dim).
    g = jnp.broadcast_to(gamma_ref[...].astype(jnp.float32), y.shape)
    b = jnp.broadcast_to(beta_ref[...].astype(jnp.float32), y.shape)
    o_ref[...] = ((y - mean) * inv_std * g + b).astype(o_ref.dtype)


def add_norm(x, sublayer_out, gamma, beta):
    """x, sublayer_out: (B, S, D); gamma, beta: (D,). Returns (B, S, D)."""
    B, S, D = x.shape
    rows = B * S
    itemsize = jnp.dtype(x.dtype).itemsize

    # Row-tile sizing: purely HBM-bandwidth bound, so pick the largest row tile that
    # keeps the 6 live buffers (2 inputs + 1 output, double-buffered) under ~24 MiB.
    per_buffer_budget = 4 * 1024 * 1024
    cap = per_buffer_budget // max(1, D * itemsize)
    cap = max(8, min(1024, (cap // 8) * 8))  # multiple of 8 sublanes
    if rows <= cap:
        tile_rows = rows  # single block along rows (exempt from the 8-row rule)
    else:
        tile_rows = cap
    padded_rows = _round_up(rows, tile_rows)

    # NOTE: D % 128 == 0 is the lane-dense fast path (unmasked vst). Small D (e.g. the
    # demo's 32) uses a full-D block: correct, lower lane utilization. gamma/beta are
    # never padded, so they always match the data's D.
    x2 = x.reshape(rows, D)
    s2 = sublayer_out.reshape(rows, D)
    if padded_rows != rows:
        pad = padded_rows - rows
        x2 = jnp.pad(x2, ((0, pad), (0, 0)))
        s2 = jnp.pad(s2, ((0, pad), (0, 0)))
    g2 = gamma.reshape(1, D)
    b2 = beta.reshape(1, D)

    out2 = pl.pallas_call(
        _addnorm_kernel,
        out_shape=jax.ShapeDtypeStruct((padded_rows, D), x.dtype),
        grid_spec=pltpu.PrefetchScalarGridSpec(
            num_scalar_prefetch=0,
            grid=(padded_rows // tile_rows,),
            in_specs=[
                pl.BlockSpec((tile_rows, D), lambda i: (i, 0)),
                pl.BlockSpec((tile_rows, D), lambda i: (i, 0)),
                pl.BlockSpec((1, D), lambda i: (0, 0)),
                pl.BlockSpec((1, D), lambda i: (0, 0)),
            ],
            out_specs=pl.BlockSpec((tile_rows, D), lambda i: (i, 0)),
        ),
        compiler_params=pltpu.CompilerParams(
            dimension_semantics=("parallel",),      # v7x: shard row loop over 2 TCs
            vmem_limit_bytes=48 * 1024 * 1024,      # > default scoped limit, < v7x physical
        ),
    )(x2, s2, g2, b2)

    if padded_rows != rows:
        out2 = out2[:rows]
    return out2.reshape(B, S, D)


# ---------------------------------------------------------------------------
# Linear (matmul + bias, optional fused ReLU)
# ---------------------------------------------------------------------------
def _linear_kernel(x_ref, w_ref, b_ref, o_ref, acc_ref, *, activation):
    @pl.when(pl.program_id(2) == 0)
    def _():
        acc_ref[...] = jnp.zeros_like(acc_ref)

    acc_ref[...] += jnp.dot(
        x_ref[...].astype(jnp.float32),
        w_ref[...].astype(jnp.float32),
        preferred_element_type=jnp.float32,
    )

    @pl.when(pl.program_id(2) == pl.num_programs(2) - 1)
    def _():
        r = acc_ref[...] + b_ref[...].astype(jnp.float32)
        if activation == "relu":
            r = jnp.maximum(r, 0.0)
        o_ref[...] = r.astype(o_ref.dtype)


def _pick_tile(dim, max_tile, align):
    """Return (tile, padded_dim): full-dim single block for small dims, else aligned tiles."""
    if dim <= max_tile:
        return dim, dim
    tile = max(align, (max_tile // align) * align)
    return tile, _round_up(dim, tile)


def linear(x2, w, b, activation=None, *, tm_max=256, tn_max=256, tk_max=512):
    """x2: (M, K), w: (K, N), b: (N,) -> (M, N), optionally fused ReLU."""
    M, K = x2.shape
    _, N = w.shape
    tm, Mp = _pick_tile(M, tm_max, 8)
    tn, Np = _pick_tile(N, tn_max, 128)
    tk, Kp = _pick_tile(K, tk_max, 128)
    if Mp != M or Kp != K:
        x2 = jnp.pad(x2, ((0, Mp - M), (0, Kp - K)))
    if Kp != K or Np != N:
        w = jnp.pad(w, ((0, Kp - K), (0, Np - N)))
    b2 = b.reshape(1, N)
    if Np != N:
        b2 = jnp.pad(b2, ((0, 0), (0, Np - N)))

    out = pl.pallas_call(
        functools.partial(_linear_kernel, activation=activation),
        out_shape=jax.ShapeDtypeStruct((Mp, Np), x2.dtype),
        grid_spec=pltpu.PrefetchScalarGridSpec(
            num_scalar_prefetch=0,
            grid=(Mp // tm, Np // tn, Kp // tk),
            in_specs=[
                pl.BlockSpec((tm, tk), lambda i, j, k: (i, k)),
                pl.BlockSpec((tk, tn), lambda i, j, k: (k, j)),
                pl.BlockSpec((1, tn), lambda i, j, k: (0, j)),
            ],
            out_specs=pl.BlockSpec((tm, tn), lambda i, j, k: (i, j)),
            scratch_shapes=[pltpu.VMEM((tm, tn), jnp.float32)],
        ),
        compiler_params=pltpu.CompilerParams(
            dimension_semantics=("parallel", "parallel", "arbitrary"),
        ),
    )(x2, w, b2)

    if Mp != M or Np != N:
        out = out[:M, :N]
    return out


# ---------------------------------------------------------------------------
# Multi-head attention (per batch/head attention kernel + Pallas linear projections)
# ---------------------------------------------------------------------------
def _attn_kernel(q_ref, k_ref, v_ref, bias_ref, qm_ref, o_ref, *, scale):
    # q/k/v/o blocks: (1, 1, S, dk); bias: (1, Sq, Sk); qm: (1, Sq, 1)
    q = q_ref[...][0].astype(jnp.float32)   # (1, Sq, dk)
    k = k_ref[...][0].astype(jnp.float32)   # (1, Sk, dk)
    v = v_ref[...][0].astype(jnp.float32)   # (1, Sk, dk)
    s = jnp.einsum("bqd,bkd->bqk", q, k, preferred_element_type=jnp.float32) * scale
    s = s + bias_ref[...]                   # additive causal / key-padding mask (-inf)
    m = jnp.max(s, axis=-1, keepdims=True)
    p = jnp.exp(s - m)
    attn = p / jnp.sum(p, axis=-1, keepdims=True)
    attn = attn * qm_ref[...]               # zero out padded query rows
    out = jnp.einsum("bqk,bkd->bqd", attn, v, preferred_element_type=jnp.float32)
    o_ref[...] = out[None].astype(o_ref.dtype)


def multi_head_attention(q_in, kv_in, q_mask, k_mask, p, *, nhead, causal):
    """q_in, kv_in: (B, S, D); masks: (B, S) with 0 = masked."""
    B, Sq, D = q_in.shape
    Sk = kv_in.shape[1]
    dk = D // nhead

    q = linear(q_in.reshape(B * Sq, D), p["Wq"], p["bq"]).reshape(B, Sq, nhead, dk)
    k = linear(kv_in.reshape(B * Sk, D), p["Wk"], p["bk"]).reshape(B, Sk, nhead, dk)
    v = linear(kv_in.reshape(B * Sk, D), p["Wv"], p["bv"]).reshape(B, Sk, nhead, dk)
    q = q.transpose(0, 2, 1, 3)  # (B, H, Sq, dk)
    k = k.transpose(0, 2, 1, 3)
    v = v.transpose(0, 2, 1, 3)

    # Additive attention bias: -inf above diagonal (causal) and at padded keys.
    kbias = jnp.where(k_mask == 0, -jnp.inf, 0.0).astype(jnp.float32)        # (B, Sk)
    if causal:
        row = jnp.arange(Sq)[:, None]
        col = jnp.arange(Sk)[None, :]
        cbias = jnp.where(col > row, -jnp.inf, 0.0).astype(jnp.float32)       # (Sq, Sk)
    else:
        cbias = jnp.zeros((Sq, Sk), jnp.float32)
    bias = cbias[None, :, :] + kbias[:, None, :]                              # (B, Sq, Sk)
    qm = q_mask.astype(jnp.float32)[:, :, None]                               # (B, Sq, 1)

    out = pl.pallas_call(
        functools.partial(_attn_kernel, scale=1.0 / math.sqrt(dk)),
        out_shape=jax.ShapeDtypeStruct((B, nhead, Sq, dk), q_in.dtype),
        grid_spec=pltpu.PrefetchScalarGridSpec(
            num_scalar_prefetch=0,
            grid=(B, nhead),
            in_specs=[
                pl.BlockSpec((1, 1, Sq, dk), lambda b, h: (b, h, 0, 0)),
                pl.BlockSpec((1, 1, Sk, dk), lambda b, h: (b, h, 0, 0)),
                pl.BlockSpec((1, 1, Sk, dk), lambda b, h: (b, h, 0, 0)),
                pl.BlockSpec((1, Sq, Sk), lambda b, h: (b, 0, 0)),
                pl.BlockSpec((1, Sq, 1), lambda b, h: (b, 0, 0)),
            ],
            out_specs=pl.BlockSpec((1, 1, Sq, dk), lambda b, h: (b, h, 0, 0)),
        ),
        compiler_params=pltpu.CompilerParams(
            dimension_semantics=("parallel", "parallel"),
        ),
    )(q, k, v, bias, qm)

    out = out.transpose(0, 2, 1, 3).reshape(B * Sq, D)
    out = linear(out, p["Wo"], p["bo"]).reshape(B, Sq, D)
    return out


# ---------------------------------------------------------------------------
# FeedForward / DecoderLayer / Decoder (composition of the Pallas kernels)
# ---------------------------------------------------------------------------
def feed_forward(x, p):
    B, S, D = x.shape
    h = linear(x.reshape(B * S, D), p["W1"], p["b1"], activation="relu")
    return linear(h, p["W2"], p["b2"]).reshape(B, S, D)


def decoder_layer(tgt, memory, tgt_mask, mem_mask, p, *, nhead):
    a1 = multi_head_attention(tgt, tgt, tgt_mask, tgt_mask, p["mha1"], nhead=nhead, causal=True)
    out = add_norm(tgt, a1, p["ln1_g"], p["ln1_b"])
    a2 = multi_head_attention(out, memory, tgt_mask, mem_mask, p["mha2"], nhead=nhead, causal=False)
    out = add_norm(out, a2, p["ln2_g"], p["ln2_b"])
    ff = feed_forward(out, p["ff"])
    return add_norm(out, ff, p["ln3_g"], p["ln3_b"])


def decoder_forward(params, tgt, memory, tgt_mask, mem_mask, *, nhead):
    for p in params["layers"]:
        tgt = decoder_layer(tgt, memory, tgt_mask, mem_mask, p, nhead=nhead)
    return tgt


def init_params(key, d_model, num_layers, dim_feedforward):
    def lin_init(k, fan_in, fan_out):
        kw, kb = jax.random.split(k)
        W = jax.random.normal(kw, (fan_in, fan_out), jnp.float32) / jnp.sqrt(fan_in)
        b = 0.02 * jax.random.normal(kb, (fan_out,), jnp.float32)
        return W, b

    def mha_init(k):
        ks = jax.random.split(k, 4)
        Wq, bq = lin_init(ks[0], d_model, d_model)
        Wk, bk = lin_init(ks[1], d_model, d_model)
        Wv, bv = lin_init(ks[2], d_model, d_model)
        Wo, bo = lin_init(ks[3], d_model, d_model)
        return dict(Wq=Wq, bq=bq, Wk=Wk, bk=bk, Wv=Wv, bv=bv, Wo=Wo, bo=bo)

    ar = jnp.arange(d_model, dtype=jnp.float32)
    layers = []
    for _ in range(num_layers):
        key, k1, k2, k3, k4 = jax.random.split(key, 5)
        W1, b1 = lin_init(k3, d_model, dim_feedforward)
        W2, b2 = lin_init(k4, dim_feedforward, d_model)
        layers.append(dict(
            mha1=mha_init(k1), mha2=mha_init(k2),
            ff=dict(W1=W1, b1=b1, W2=W2, b2=b2),
            ln1_g=1.0 + 0.01 * ar, ln1_b=0.01 * ar,
            ln2_g=jnp.ones((d_model,), jnp.float32), ln2_b=jnp.zeros((d_model,), jnp.float32),
            ln3_g=1.0 - 0.005 * ar, ln3_b=jnp.zeros((d_model,), jnp.float32),
        ))
    return dict(layers=layers)


# ---------------------------------------------------------------------------
# Pure-JAX reference (mirrors the PyTorch module, dropout = identity)
# ---------------------------------------------------------------------------
def _ref_linear(x, W, b):
    return x @ W + b


def _ref_mha(q_in, kv_in, q_mask, k_mask, p, *, nhead, causal):
    B, Sq, D = q_in.shape
    Sk = kv_in.shape[1]
    dk = D // nhead
    q = _ref_linear(q_in, p["Wq"], p["bq"]).reshape(B, Sq, nhead, dk).transpose(0, 2, 1, 3)
    k = _ref_linear(kv_in, p["Wk"], p["bk"]).reshape(B, Sk, nhead, dk).transpose(0, 2, 1, 3)
    v = _ref_linear(kv_in, p["Wv"], p["bv"]).reshape(B, Sk, nhead, dk).transpose(0, 2, 1, 3)
    att = jnp.einsum("bhqd,bhkd->bhqk", q, k) / math.sqrt(dk)
    if causal:
        row = jnp.arange(Sq)[:, None]
        col = jnp.arange(Sk)[None, :]
        att = att + jnp.where(col > row, -jnp.inf, 0.0).astype(jnp.float32)[None, None]
    att = jnp.where(k_mask[:, None, None, :] == 0, -jnp.inf, att)
    att = jax.nn.softmax(att, axis=-1)
    att = jnp.where(q_mask[:, None, :, None] == 0, 0.0, att)
    out = jnp.einsum("bhqk,bhkd->bhqd", att, v).transpose(0, 2, 1, 3).reshape(B, Sq, D)
    return _ref_linear(out, p["Wo"], p["bo"])


def _ref_add_norm(x, s, g, b):
    y = x + s
    mean = jnp.mean(y, axis=-1, keepdims=True)
    var = jnp.mean((y - mean) ** 2, axis=-1, keepdims=True)
    return (y - mean) / jnp.sqrt(var + EPS) * g + b


def _ref_decoder(params, tgt, memory, tgt_mask, mem_mask, *, nhead):
    for p in params["layers"]:
        a1 = _ref_mha(tgt, tgt, tgt_mask, tgt_mask, p["mha1"], nhead=nhead, causal=True)
        out = _ref_add_norm(tgt, a1, p["ln1_g"], p["ln1_b"])
        a2 = _ref_mha(out, memory, tgt_mask, mem_mask, p["mha2"], nhead=nhead, causal=False)
        out = _ref_add_norm(out, a2, p["ln2_g"], p["ln2_b"])
        ff = _ref_linear(jnp.maximum(_ref_linear(out, p["ff"]["W1"], p["ff"]["b1"]), 0.0),
                         p["ff"]["W2"], p["ff"]["b2"])
        tgt = _ref_add_norm(out, ff, p["ln3_g"], p["ln3_b"])
    return tgt


if __name__ == "__main__":
    B, S, D = 2, 8, 32           # batch, seq_len, d_model
    NHEAD, DFF, NUM_LAYERS = 4, 64, 2

    key = jax.random.PRNGKey(0)
    key, kt, km, kp = jax.random.split(key, 4)
    tgt = jax.random.normal(kt, (B, S, D), dtype=jnp.float32)
    memory = jax.random.normal(km, (B, S, D), dtype=jnp.float32)

    # 0 = masked, 1 = not masked (keep at least one valid key per row).
    tgt_mask = jnp.ones((B, S), dtype=jnp.int32).at[1, -1].set(0)
    mem_mask = jnp.ones((B, S), dtype=jnp.int32).at[0, -1].set(0)

    params = init_params(kp, D, NUM_LAYERS, DFF)

    fwd = jax.jit(functools.partial(decoder_forward, nhead=NHEAD))
    out = fwd(params, tgt, memory, tgt_mask, mem_mask)
    jax.block_until_ready(out)

    ref = _ref_decoder(params, tgt, memory, tgt_mask, mem_mask, nhead=NHEAD)
    assert out.shape == (B, S, D)
    assert bool(jnp.all(jnp.isfinite(out)))
    # Loose-ish tolerance: XLA's default f32 matmul precision on TPU differs slightly
    # from the in-kernel MXU path.
    assert jnp.allclose(out, ref, atol=2e-2, rtol=2e-2), float(jnp.max(jnp.abs(out - ref)))

    print("KERNEL_OK")
</pallas_src>

<mosaic_0001>
module attributes {stable_mosaic.version = 11 : i64} {
  func.func @_linear_kernel(%arg0: i32, %arg1: i32, %arg2: i32, %arg3: memref<16x32xf32, #tpu.memory_space<vmem>>, %arg4: memref<32x32xf32, #tpu.memory_space<vmem>>, %arg5: memref<1x32xf32, #tpu.memory_space<vmem>>, %arg6: memref<16x32xf32, #tpu.memory_space<vmem>>, %arg7: memref<16x32xf32, #tpu.memory_space<vmem>>) attributes {dimension_semantics = [#tpu.dimension_semantics<parallel>, #tpu.dimension_semantics<parallel>, #tpu.dimension_semantics<arbitrary>], iteration_bounds = array<i64: 1, 1, 1>, scalar_prefetch = 0 : i64, scratch_operands = 1 : i64, tpu.core_type = #tpu.core_type<tc>, window_params = [{transform_indices = @transform_0, window_bounds = array<i64: 16, 32>}, {transform_indices = @transform_1, window_bounds = array<i64: 32, 32>}, {transform_indices = @transform_2, window_bounds = array<i64: 1, 32>}, {transform_indices = @transform_3, window_bounds = array<i64: 16, 32>}]} {
    %c0_i32 = arith.constant 0 : i32
    %0 = arith.cmpi eq, %arg2, %c0_i32 : i32
    %1 = arith.extui %0 : i1 to i32
    %c0_i32_0 = arith.constant 0 : i32
    %2 = arith.cmpi ne, %1, %c0_i32_0 : i32
    scf.if %2 {
      %cst_10 = arith.constant 0.000000e+00 : f32
      %12 = vector.broadcast %cst_10 : f32 to vector<16x32xf32>
      %c0_11 = arith.constant 0 : index
      %c0_12 = arith.constant 0 : index
      %13 = vector.load %arg7[%c0_11, %c0_12] : memref<16x32xf32, #tpu.memory_space<vmem>>, vector<16x32xf32>
      tpu.vector_store %arg7[%c0_11, %c0_12], %12 {strides = array<i32>} : memref<16x32xf32, #tpu.memory_space<vmem>>, vector<16x32xf32>,
    } else {
    }
    %c0 = arith.constant 0 : index
    %c0_1 = arith.constant 0 : index
    %3 = vector.load %arg7[%c0, %c0_1] : memref<16x32xf32, #tpu.memory_space<vmem>>, vector<16x32xf32>
    %c0_2 = arith.constant 0 : index
    %c0_3 = arith.constant 0 : index
    %4 = vector.load %arg3[%c0_2, %c0_3] : memref<16x32xf32, #tpu.memory_space<vmem>>, vector<16x32xf32>
    %c0_4 = arith.constant 0 : index
    %c0_5 = arith.constant 0 : index
    %5 = vector.load %arg4[%c0_4, %c0_5] : memref<32x32xf32, #tpu.memory_space<vmem>>, vector<32x32xf32>
    %cst = arith.constant dense<0.000000e+00> : vector<16x32xf32>
    %6 = tpu.matmul %4, %5, %cst {dimension_numbers = #tpu.dot_dimension_numbers<[1], [0], [0], [1], [0, 0, 1, 1], [], []>} : vector<16x32xf32>, vector<32x32xf32>, vector<16x32xf32> -> vector<16x32xf32>
    %7 = arith.addf %3, %6 : vector<16x32xf32>
    %c0_6 = arith.constant 0 : index
    %c0_7 = arith.constant 0 : index
    %8 = vector.load %arg7[%c0_6, %c0_7] : memref<16x32xf32, #tpu.memory_space<vmem>>, vector<16x32xf32>
    tpu.vector_store %arg7[%c0_6, %c0_7], %7 {strides = array<i32>} : memref<16x32xf32, #tpu.memory_space<vmem>>, vector<16x32xf32>,
    %c0_i32_8 = arith.constant 0 : i32
    %9 = arith.cmpi eq, %arg2, %c0_i32_8 : i32
    %10 = arith.extui %9 : i1 to i32
    %c0_i32_9 = arith.constant 0 : i32
    %11 = arith.cmpi ne, %10, %c0_i32_9 : i32
    scf.if %11 {
      %c0_10 = arith.constant 0 : index
      %c0_11 = arith.constant 0 : index
      %12 = vector.load %arg7[%c0_10, %c0_11] : memref<16x32xf32, #tpu.memory_space<vmem>>, vector<16x32xf32>
      %c0_12 = arith.constant 0 : index
      %c0_13 = arith.constant 0 : index
      %13 = vector.load %arg5[%c0_12, %c0_13] : memref<1x32xf32, #tpu.memory_space<vmem>>, vector<1x32xf32>
      %14 = vector.broadcast %13 : vector<1x32xf32> to vector<16x32xf32>
      %15 = arith.addf %12, %14 : vector<16x32xf32>
      %c0_14 = arith.constant 0 : index
      %c0_15 = arith.constant 0 : index
      %16 = vector.load %arg6[%c0_14, %c0_15] : memref<16x32xf32, #tpu.memory_space<vmem>>, vector<16x32xf32>
      tpu.vector_store %arg6[%c0_14, %c0_15], %15 {strides = array<i32>} : memref<16x32xf32, #tpu.memory_space<vmem>>, vector<16x32xf32>,
    } else {
    }
    return
  }
  func.func @transform_0(%arg0: i32, %arg1: i32, %arg2: i32) -> (i32, i32) {
    %c0_i32 = arith.constant 0 : i32
    return %arg0, %arg2 : i32, i32
  }
  func.func @transform_1(%arg0: i32, %arg1: i32, %arg2: i32) -> (i32, i32) {
    %c0_i32 = arith.constant 0 : i32
    return %arg2, %arg1 : i32, i32
  }
  func.func @transform_2(%arg0: i32, %arg1: i32, %arg2: i32) -> (i32, i32) {
    %c0_i32 = arith.constant 0 : i32
    %c0_i32_0 = arith.constant 0 : i32
    return %c0_i32, %arg1 : i32, i32
  }
  func.func @transform_3(%arg0: i32, %arg1: i32, %arg2: i32) -> (i32, i32) {
    %c0_i32 = arith.constant 0 : i32
    return %arg0, %arg1 : i32, i32
  }
}

module attributes {stable_mosaic.version = 11 : i64} {
  func.func @_attn_kernel(%arg0: i32, %arg1: i32, %arg2: memref<1x1x8x8xf32, #tpu.memory_space<vmem>>, %arg3: memref<1x1x8x8xf32, #tpu.memory_space<vmem>>, %arg4: memref<1x1x8x8xf32, #tpu.memory_space<vmem>>, %arg5: memref<1x8x8xf32, #tpu.memory_space<vmem>>, %arg6: memref<1x8x1xf32, #tpu.memory_space<vmem>>, %arg7: memref<1x1x8x8xf32, #tpu.memory_space<vmem>>) attributes {dimension_semantics = [#tpu.dimension_semantics<parallel>, #tpu.dimension_semantics<parallel>], iteration_bounds = array<i64: 2, 4>, scalar_prefetch = 0 : i64, scratch_operands = 0 : i64, tpu.core_type = #tpu.core_type<tc>, window_params = [{transform_indices = @transform_0, window_bounds = array<i64: 1, 1, 8, 8>}, {transform_indices = @transform_1, window_bounds = array<i64: 1, 1, 8, 8>}, {transform_indices = @transform_2, window_bounds = array<i64: 1, 1, 8, 8>}, {transform_indices = @transform_3, window_bounds = array<i64: 1, 8, 8>}, {transform_indices = @transform_4, window_bounds = array<i64: 1, 8, 1>}, {transform_indices = @transform_5, window_bounds = array<i64: 1, 1, 8, 8>}]} {
    %c0 = arith.constant 0 : index
    %c0_0 = arith.constant 0 : index
    %c0_1 = arith.constant 0 : index
    %c0_2 = arith.constant 0 : index
    %0 = vector.load %arg2[%c0, %c0_0, %c0_1, %c0_2] : memref<1x1x8x8xf32, #tpu.memory_space<vmem>>, vector<1x1x8x8xf32>
    %1 = vector.shape_cast %0 : vector<1x1x8x8xf32> to vector<1x8x8xf32>
    %c0_3 = arith.constant 0 : index
    %c0_4 = arith.constant 0 : index
    %c0_5 = arith.constant 0 : index
    %c0_6 = arith.constant 0 : index
    %2 = vector.load %arg3[%c0_3, %c0_4, %c0_5, %c0_6] : memref<1x1x8x8xf32, #tpu.memory_space<vmem>>, vector<1x1x8x8xf32>
    %3 = vector.shape_cast %2 : vector<1x1x8x8xf32> to vector<1x8x8xf32>
    %c0_7 = arith.constant 0 : index
    %c0_8 = arith.constant 0 : index
    %c0_9 = arith.constant 0 : index
    %c0_10 = arith.constant 0 : index
    %4 = vector.load %arg4[%c0_7, %c0_8, %c0_9, %c0_10] : memref<1x1x8x8xf32, #tpu.memory_space<vmem>>, vector<1x1x8x8xf32>
    %5 = vector.shape_cast %4 : vector<1x1x8x8xf32> to vector<1x8x8xf32>
    "tpu.trace_start"() <{level = 10 : i32, message = "bqd,bkd->bqk"}> : () -> ()
    %cst = arith.constant dense<0.000000e+00> : vector<1x8x8xf32>
    %6 = tpu.matmul %1, %3, %cst {dimension_numbers = #tpu.dot_dimension_numbers<[2], [2], [1], [1], [0, 0, 0, 1, 1, 1], [0], [0]>} : vector<1x8x8xf32>, vector<1x8x8xf32>, vector<1x8x8xf32> -> vector<1x8x8xf32>
    "tpu.trace_stop"() : () -> ()
    %cst_11 = arith.constant 0.353553385 : f32
    %7 = vector.broadcast %cst_11 : f32 to vector<1x8x8xf32>
    %8 = arith.mulf %6, %7 : vector<1x8x8xf32>
    %c0_12 = arith.constant 0 : index
    %c0_13 = arith.constant 0 : index
    %c0_14 = arith.constant 0 : index
    %9 = vector.load %arg5[%c0_12, %c0_13, %c0_14] : memref<1x8x8xf32, #tpu.memory_space<vmem>>, vector<1x8x8xf32>
    %10 = arith.addf %8, %9 : vector<1x8x8xf32>
    %cst_15 = arith.constant dense<0xFF800000> : vector<1x8xf32>
    %11 = vector.multi_reduction <maximumf>, %10, %cst_15 [2] : vector<1x8x8xf32> to vector<1x8xf32>
    %12 = vector.shape_cast %11 : vector<1x8xf32> to vector<1x8x1xf32>
    %13 = vector.broadcast %12 : vector<1x8x1xf32> to vector<1x8x8xf32>
    %14 = arith.subf %10, %13 : vector<1x8x8xf32>
    %15 = math.exp %14 : vector<1x8x8xf32>
    %cst_16 = arith.constant dense<0.000000e+00> : vector<1x8xf32>
    %16 = vector.multi_reduction <add>, %15, %cst_16 [2] : vector<1x8x8xf32> to vector<1x8xf32>
    %17 = vector.shape_cast %16 : vector<1x8xf32> to vector<1x8x1xf32>
    %18 = vector.broadcast %17 : vector<1x8x1xf32> to vector<1x8x8xf32>
    %19 = arith.divf %15, %18 : vector<1x8x8xf32>
    %c0_17 = arith.constant 0 : index
    %c0_18 = arith.constant 0 : index
    %c0_19 = arith.constant 0 : index
    %20 = vector.load %arg6[%c0_17, %c0_18, %c0_19] : memref<1x8x1xf32, #tpu.memory_space<vmem>>, vector<1x8x1xf32>
    %21 = vector.broadcast %20 : vector<1x8x1xf32> to vector<1x8x8xf32>
    %22 = arith.mulf %19, %21 : vector<1x8x8xf32>
    "tpu.trace_start"() <{level = 10 : i32, message = "bqk,bkd->bqd"}> : () -> ()
    %cst_20 = arith.constant dense<0.000000e+00> : vector<1x8x8xf32>
    %23 = tpu.matmul %22, %5, %cst_20 {dimension_numbers = #tpu.dot_dimension_numbers<[2], [1], [1], [2], [0, 0, 0, 1, 1, 2], [0], [0]>} : vector<1x8x8xf32>, vector<1x8x8xf32>, vector<1x8x8xf32> -> vector<1x8x8xf32>
    "tpu.trace_stop"() : () -> ()
    %24 = vector.shape_cast %23 : vector<1x8x8xf32> to vector<1x1x8x8xf32>
    %c0_21 = arith.constant 0 : index
    %c0_22 = arith.constant 0 : index
    %c0_23 = arith.constant 0 : index
    %c0_24 = arith.constant 0 : index
    %25 = vector.load %arg7[%c0_21, %c0_22, %c0_23, %c0_24] : memref<1x1x8x8xf32, #tpu.memory_space<vmem>>, vector<1x1x8x8xf32>
    tpu.vector_store %arg7[%c0_21, %c0_22, %c0_23, %c0_24], %24 {strides = array<i32>} : memref<1x1x8x8xf32, #tpu.memory_space<vmem>>, vector<1x1x8x8xf32>,
    return
  }
  func.func @transform_0(%arg0: i32, %arg1: i32) -> (i32, i32, i32, i32) {
    %c0_i32 = arith.constant 0 : i32
    %c0_i32_0 = arith.constant 0 : i32
    %c0_i32_1 = arith.constant 0 : i32
    return %arg0, %arg1, %c0_i32, %c0_i32_0 : i32, i32, i32, i32
  }
  func.func @transform_1(%arg0: i32, %arg1: i32) -> (i32, i32, i32, i32) {
    %c0_i32 = arith.constant 0 : i32
    %c0_i32_0 = arith.constant 0 : i32
    %c0_i32_1 = arith.constant 0 : i32
    return %arg0, %arg1, %c0_i32, %c0_i32_0 : i32, i32, i32, i32
  }
  func.func @transform_2(%arg0: i32, %arg1: i32) -> (i32, i32, i32, i32) {
    %c0_i32 = arith.constant 0 : i32
    %c0_i32_0 = arith.constant 0 : i32
    %c0_i32_1 = arith.constant 0 : i32
    return %arg0, %arg1, %c0_i32, %c0_i32_0 : i32, i32, i32, i32
  }
  func.func @transform_3(%arg0: i32, %arg1: i32) -> (i32, i32, i32) {
    %c0_i32 = arith.constant 0 : i32
    %c0_i32_0 = arith.constant 0 : i32
    %c0_i32_1 = arith.constant 0 : i32
    return %arg0, %c0_i32, %c0_i32_0 : i32, i32, i32
  }
  func.func @transform_4(%arg0: i32, %arg1: i32) -> (i32, i32, i32) {
    %c0_i32 = arith.constant 0 : i32
    %c0_i32_0 = arith.constant 0 : i32
    %c0_i32_1 = arith.constant 0 : i32
    return %arg0, %c0_i32, %c0_i32_0 : i32, i32, i32
  }
  func.func @transform_5(%arg0: i32, %arg1: i32) -> (i32, i32, i32, i32) {
    %c0_i32 = arith.constant 0 : i32
    %c0_i32_0 = arith.constant 0 : i32
    %c0_i32_1 = arith.constant 0 : i32
    return %arg0, %arg1, %c0_i32, %c0_i32_0 : i32, i32, i32, i32
  }
}

module attributes {stable_mosaic.version = 11 : i64} {
  func.func @_addnorm_kernel(%arg0: i32, %arg1: memref<16x32xf32, #tpu.memory_space<vmem>>, %arg2: memref<16x32xf32, #tpu.memory_space<vmem>>, %arg3: memref<1x32xf32, #tpu.memory_space<vmem>>, %arg4: memref<1x32xf32, #tpu.memory_space<vmem>>, %arg5: memref<16x32xf32, #tpu.memory_space<vmem>>) attributes {dimension_semantics = [#tpu.dimension_semantics<parallel>], iteration_bounds = array<i64: 1>, scalar_prefetch = 0 : i64, scratch_operands = 0 : i64, tpu.core_type = #tpu.core_type<tc>, window_params = [{transform_indices = @transform_0, window_bounds = array<i64: 16, 32>}, {transform_indices = @transform_1, window_bounds = array<i64: 16, 32>}, {pipeline_mode = #tpu.pipeline_mode<synchronous>, transform_indices = @transform_2, window_bounds = array<i64: 1, 32>}, {pipeline_mode = #tpu.pipeline_mode<synchronous>, transform_indices = @transform_3, window_bounds = array<i64: 1, 32>}, {transform_indices = @transform_4, window_bounds = array<i64: 16, 32>}]} {
    %c0 = arith.constant 0 : index
    %c0_0 = arith.constant 0 : index
    %0 = vector.load %arg1[%c0, %c0_0] : memref<16x32xf32, #tpu.memory_space<vmem>>, vector<16x32xf32>
    %c0_1 = arith.constant 0 : index
    %c0_2 = arith.constant 0 : index
    %1 = vector.load %arg2[%c0_1, %c0_2] : memref<16x32xf32, #tpu.memory_space<vmem>>, vector<16x32xf32>
    %2 = arith.addf %0, %1 : vector<16x32xf32>
    %cst = arith.constant dense<0.000000e+00> : vector<16xf32>
    %3 = vector.multi_reduction <add>, %2, %cst [1] : vector<16x32xf32> to vector<16xf32>
    %4 = vector.shape_cast %3 : vector<16xf32> to vector<16x1xf32>
    %cst_3 = arith.constant 3.125000e-02 : f32
    %5 = vector.broadcast %cst_3 : f32 to vector<16x1xf32>
    %6 = arith.mulf %4, %5 : vector<16x1xf32>
    %7 = arith.mulf %2, %2 : vector<16x32xf32>
    %cst_4 = arith.constant dense<0.000000e+00> : vector<16xf32>
    %8 = vector.multi_reduction <add>, %7, %cst_4 [1] : vector<16x32xf32> to vector<16xf32>
    %9 = vector.shape_cast %8 : vector<16xf32> to vector<16x1xf32>
    %cst_5 = arith.constant 3.125000e-02 : f32
    %10 = vector.broadcast %cst_5 : f32 to vector<16x1xf32>
    %11 = arith.mulf %9, %10 : vector<16x1xf32>
    %12 = arith.mulf %6, %6 : vector<16x1xf32>
    %13 = arith.subf %11, %12 : vector<16x1xf32>
    %cst_6 = arith.constant 9.99999974E-6 : f32
    %14 = vector.broadcast %cst_6 : f32 to vector<16x1xf32>
    %15 = arith.addf %13, %14 : vector<16x1xf32>
    %16 = math.rsqrt %15 : vector<16x1xf32>
    %c0_7 = arith.constant 0 : index
    %c0_8 = arith.constant 0 : index
    %17 = vector.load %arg3[%c0_7, %c0_8] : memref<1x32xf32, #tpu.memory_space<vmem>>, vector<1x32xf32>
    %18 = vector.shape_cast %17 : vector<1x32xf32> to vector<1x32xf32>
    %19 = vector.broadcast %18 : vector<1x32xf32> to vector<16x32xf32>
    %c0_9 = arith.constant 0 : index
    %c0_10 = arith.constant 0 : index
    %20 = vector.load %arg4[%c0_9, %c0_10] : memref<1x32xf32, #tpu.memory_space<vmem>>, vector<1x32xf32>
    %21 = vector.shape_cast %20 : vector<1x32xf32> to vector<1x32xf32>
    %22 = vector.broadcast %21 : vector<1x32xf32> to vector<16x32xf32>
    %23 = vector.broadcast %6 : vector<16x1xf32> to vector<16x32xf32>
    %24 = arith.subf %2, %23 : vector<16x32xf32>
    %25 = vector.broadcast %16 : vector<16x1xf32> to vector<16x32xf32>
    %26 = arith.mulf %24, %25 : vector<16x32xf32>
    %27 = arith.mulf %26, %19 : vector<16x32xf32>
    %28 = arith.addf %27, %22 : vector<16x32xf32>
    %c0_11 = arith.constant 0 : index
    %c0_12 = arith.constant 0 : index
    %29 = vector.load %arg5[%c0_11, %c0_12] : memref<16x32xf32, #tpu.memory_space<vmem>>, vector<16x32xf32>
    tpu.vector_store %arg5[%c0_11, %c0_12], %28 {strides = array<i32>} : memref<16x32xf32, #tpu.memory_space<vmem>>, vector<16x32xf32>,
    return
  }
  func.func @transform_0(%arg0: i32) -> (i32, i32) {
    %c0_i32 = arith.constant 0 : i32
    %c0_i32_0 = arith.constant 0 : i32
    return %arg0, %c0_i32 : i32, i32
  }
  func.func @transform_1(%arg0: i32) -> (i32, i32) {
    %c0_i32 = arith.constant 0 : i32
    %c0_i32_0 = arith.constant 0 : i32
    return %arg0, %c0_i32 : i32, i32
  }
  func.func @transform_2(%arg0: i32) -> (i32, i32) {
    %c0_i32 = arith.constant 0 : i32
    %c0_i32_0 = arith.constant 0 : i32
    %c0_i32_1 = arith.constant 0 : i32
    return %c0_i32, %c0_i32_0 : i32, i32
  }
  func.func @transform_3(%arg0: i32) -> (i32, i32) {
    %c0_i32 = arith.constant 0 : i32
    %c0_i32_0 = arith.constant 0 : i32
    %c0_i32_1 = arith.constant 0 : i32
    return %c0_i32, %c0_i32_0 : i32, i32
  }
  func.func @transform_4(%arg0: i32) -> (i32, i32) {
    %c0_i32 = arith.constant 0 : i32
    %c0_i32_0 = arith.constant 0 : i32
    return %arg0, %c0_i32 : i32, i32
  }
}

module attributes {stable_mosaic.version = 11 : i64} {
  func.func @_linear_kernel(%arg0: i32, %arg1: i32, %arg2: i32, %arg3: memref<16x32xf32, #tpu.memory_space<vmem>>, %arg4: memref<32x64xf32, #tpu.memory_space<vmem>>, %arg5: memref<1x64xf32, #tpu.memory_space<vmem>>, %arg6: memref<16x64xf32, #tpu.memory_space<vmem>>, %arg7: memref<16x64xf32, #tpu.memory_space<vmem>>) attributes {dimension_semantics = [#tpu.dimension_semantics<parallel>, #tpu.dimension_semantics<parallel>, #tpu.dimension_semantics<arbitrary>], iteration_bounds = array<i64: 1, 1, 1>, scalar_prefetch = 0 : i64, scratch_operands = 1 : i64, tpu.core_type = #tpu.core_type<tc>, window_params = [{transform_indices = @transform_0, window_bounds = array<i64: 16, 32>}, {transform_indices = @transform_1, window_bounds = array<i64: 32, 64>}, {transform_indices = @transform_2, window_bounds = array<i64: 1, 64>}, {transform_indices = @transform_3, window_bounds = array<i64: 16, 64>}]} {
    %c0_i32 = arith.constant 0 : i32
    %0 = arith.cmpi eq, %arg2, %c0_i32 : i32
    %1 = arith.extui %0 : i1 to i32
    %c0_i32_0 = arith.constant 0 : i32
    %2 = arith.cmpi ne, %1, %c0_i32_0 : i32
    scf.if %2 {
      %cst_10 = arith.constant 0.000000e+00 : f32
      %12 = vector.broadcast %cst_10 : f32 to vector<16x64xf32>
      %c0_11 = arith.constant 0 : index
      %c0_12 = arith.constant 0 : index
      %13 = vector.load %arg7[%c0_11, %c0_12] : memref<16x64xf32, #tpu.memory_space<vmem>>, vector<16x64xf32>
      tpu.vector_store %arg7[%c0_11, %c0_12], %12 {strides = array<i32>} : memref<16x64xf32, #tpu.memory_space<vmem>>, vector<16x64xf32>,
    } else {
    }
    %c0 = arith.constant 0 : index
    %c0_1 = arith.constant 0 : index
    %3 = vector.load %arg7[%c0, %c0_1] : memref<16x64xf32, #tpu.memory_space<vmem>>, vector<16x64xf32>
    %c0_2 = arith.constant 0 : index
    %c0_3 = arith.constant 0 : index
    %4 = vector.load %arg3[%c0_2, %c0_3] : memref<16x32xf32, #tpu.memory_space<vmem>>, vector<16x32xf32>
    %c0_4 = arith.constant 0 : index
    %c0_5 = arith.constant 0 : index
    %5 = vector.load %arg4[%c0_4, %c0_5] : memref<32x64xf32, #tpu.memory_space<vmem>>, vector<32x64xf32>
    %cst = arith.constant dense<0.000000e+00> : vector<16x64xf32>
    %6 = tpu.matmul %4, %5, %cst {dimension_numbers = #tpu.dot_dimension_numbers<[1], [0], [0], [1], [0, 0, 1, 1], [], []>} : vector<16x32xf32>, vector<32x64xf32>, vector<16x64xf32> -> vector<16x64xf32>
    %7 = arith.addf %3, %6 : vector<16x64xf32>
    %c0_6 = arith.constant 0 : index
    %c0_7 = arith.constant 0 : index
    %8 = vector.load %arg7[%c0_6, %c0_7] : memref<16x64xf32, #tpu.memory_space<vmem>>, vector<16x64xf32>
    tpu.vector_store %arg7[%c0_6, %c0_7], %7 {strides = array<i32>} : memref<16x64xf32, #tpu.memory_space<vmem>>, vector<16x64xf32>,
    %c0_i32_8 = arith.constant 0 : i32
    %9 = arith.cmpi eq, %arg2, %c0_i32_8 : i32
    %10 = arith.extui %9 : i1 to i32
    %c0_i32_9 = arith.constant 0 : i32
    %11 = arith.cmpi ne, %10, %c0_i32_9 : i32
    scf.if %11 {
      %c0_10 = arith.constant 0 : index
      %c0_11 = arith.constant 0 : index
      %12 = vector.load %arg7[%c0_10, %c0_11] : memref<16x64xf32, #tpu.memory_space<vmem>>, vector<16x64xf32>
      %c0_12 = arith.constant 0 : index
      %c0_13 = arith.constant 0 : index
      %13 = vector.load %arg5[%c0_12, %c0_13] : memref<1x64xf32, #tpu.memory_space<vmem>>, vector<1x64xf32>
      %14 = vector.broadcast %13 : vector<1x64xf32> to vector<16x64xf32>
      %15 = arith.addf %12, %14 : vector<16x64xf32>
      %cst_14 = arith.constant 0.000000e+00 : f32
      %16 = vector.broadcast %cst_14 : f32 to vector<16x64xf32>
      %17 = arith.maximumf %15, %16 : vector<16x64xf32>
      %c0_15 = arith.constant 0 : index
      %c0_16 = arith.constant 0 : index
      %18 = vector.load %arg6[%c0_15, %c0_16] : memref<16x64xf32, #tpu.memory_space<vmem>>, vector<16x64xf32>
      tpu.vector_store %arg6[%c0_15, %c0_16], %17 {strides = array<i32>} : memref<16x64xf32, #tpu.memory_space<vmem>>, vector<16x64xf32>,
    } else {
    }
    return
  }
  func.func @transform_0(%arg0: i32, %arg1: i32, %arg2: i32) -> (i32, i32) {
    %c0_i32 = arith.constant 0 : i32
    return %arg0, %arg2 : i32, i32
  }
  func.func @transform_1(%arg0: i32, %arg1: i32, %arg2: i32) -> (i32, i32) {
    %c0_i32 = arith.constant 0 : i32
    return %arg2, %arg1 : i32, i32
  }
  func.func @transform_2(%arg0: i32, %arg1: i32, %arg2: i32) -> (i32, i32) {
    %c0_i32 = arith.constant 0 : i32
    %c0_i32_0 = arith.constant 0 : i32
    return %c0_i32, %arg1 : i32, i32
  }
  func.func @transform_3(%arg0: i32, %arg1: i32, %arg2: i32) -> (i32, i32) {
    %c0_i32 = arith.constant 0 : i32
    return %arg0, %arg1 : i32, i32
  }
}

module attributes {stable_mosaic.version = 11 : i64} {
  func.func @_addnorm_kernel(%arg0: i32, %arg1: memref<16x32xf32, #tpu.memory_space<vmem>>, %arg2: memref<16x32xf32, #tpu.memory_space<vmem>>, %arg3: memref<1x32xf32, #tpu.memory_space<vmem>>, %arg4: memref<1x32xf32, #tpu.memory_space<vmem>>, %arg5: memref<16x32xf32, #tpu.memory_space<vmem>>) attributes {dimension_semantics = [#tpu.dimension_semantics<parallel>], iteration_bounds = array<i64: 1>, scalar_prefetch = 0 : i64, scratch_operands = 0 : i64, tpu.core_type = #tpu.core_type<tc>, window_params = [{transform_indices = @transform_0, window_bounds = array<i64: 16, 32>}, {transform_indices = @transform_1, window_bounds = array<i64: 16, 32>}, {pipeline_mode = #tpu.pipeline_mode<synchronous>, transform_indices = @transform_2, window_bounds = array<i64: 1, 32>}, {pipeline_mode = #tpu.pipeline_mode<synchronous>, transform_indices = @transform_3, window_bounds = array<i64: 1, 32>}, {transform_indices = @transform_4, window_bounds = array<i64: 16, 32>}]} {
    %c0 = arith.constant 0 : index
    %c0_0 = arith.constant 0 : index
    %0 = vector.load %arg1[%c0, %c0_0] : memref<16x32xf32, #tpu.memory_space<vmem>>, vector<16x32xf32>
    %c0_1 = arith.constant 0 : index
    %c0_2 = arith.constant 0 : index
    %1 = vector.load %arg2[%c0_1, %c0_2] : memref<16x32xf32, #tpu.memory_space<vmem>>, vector<16x32xf32>
    %2 = arith.addf %0, %1 : vector<16x32xf32>
    %cst = arith.constant dense<0.000000e+00> : vector<16xf32>
    %3 = vector.multi_reduction <add>, %2, %cst [1] : vector<16x32xf32> to vector<16xf32>
    %4 = vector.shape_cast %3 : vector<16xf32> to vector<16x1xf32>
    %cst_3 = arith.constant 3.125000e-02 : f32
    %5 = vector.broadcast %cst_3 : f32 to vector<16x1xf32>
    %6 = arith.mulf %4, %5 : vector<16x1xf32>
    %7 = arith.mulf %2, %2 : vector<16x32xf32>
    %cst_4 = arith.constant dense<0.000000e+00> : vector<16xf32>
    %8 = vector.multi_reduction <add>, %7, %cst_4 [1] : vector<16x32xf32> to vector<16xf32>
    %9 = vector.shape_cast %8 : vector<16xf32> to vector<16x1xf32>
    %cst_5 = arith.constant 3.125000e-02 : f32
    %10 = vector.broadcast %cst_5 : f32 to vector<16x1xf32>
    %11 = arith.mulf %9, %10 : vector<16x1xf32>
    %12 = arith.mulf %6, %6 : vector<16x1xf32>
    %13 = arith.subf %11, %12 : vector<16x1xf32>
    %cst_6 = arith.constant 9.99999974E-6 : f32
    %14 = vector.broadcast %cst_6 : f32 to vector<16x1xf32>
    %15 = arith.addf %13, %14 : vector<16x1xf32>
    %16 = math.rsqrt %15 : vector<16x1xf32>
    %c0_7 = arith.constant 0 : index
    %c0_8 = arith.constant 0 : index
    %17 = vector.load %arg3[%c0_7, %c0_8] : memref<1x32xf32, #tpu.memory_space<vmem>>, vector<1x32xf32>
    %18 = vector.shape_cast %17 : vector<1x32xf32> to vector<1x32xf32>
    %19 = vector.broadcast %18 : vector<1x32xf32> to vector<16x32xf32>
    %c0_9 = arith.constant 0 : index
    %c0_10 = arith.constant 0 : index
    %20 = vector.load %arg4[%c0_9, %c0_10] : memref<1x32xf32, #tpu.memory_space<vmem>>, vector<1x32xf32>
    %21 = vector.shape_cast %20 : vector<1x32xf32> to vector<1x32xf32>
    %22 = vector.broadcast %21 : vector<1x32xf32> to vector<16x32xf32>
    %23 = vector.broadcast %6 : vector<16x1xf32> to vector<16x32xf32>
    %24 = arith.subf %2, %23 : vector<16x32xf32>
    %25 = vector.broadcast %16 : vector<16x1xf32> to vector<16x32xf32>
    %26 = arith.mulf %24, %25 : vector<16x32xf32>
    %27 = arith.mulf %26, %19 : vector<16x32xf32>
    %28 = arith.addf %27, %22 : vector<16x32xf32>
    %c0_11 = arith.constant 0 : index
    %c0_12 = arith.constant 0 : index
    %29 = vector.load %arg5[%c0_11, %c0_12] : memref<16x32xf32, #tpu.memory_space<vmem>>, vector<16x32xf32>
    tpu.vector_store %arg5[%c0_11, %c0_12], %28 {strides = array<i32>} : memref<16x32xf32, #tpu.memory_space<vmem>>, vector<16x32xf32>,
    return
  }
  func.func @transform_0(%arg0: i32) -> (i32, i32) {
    %c0_i32 = arith.constant 0 : i32
    %c0_i32_0 = arith.constant 0 : i32
    return %arg0, %c0_i32 : i32, i32
  }
  func.func @transform_1(%arg0: i32) -> (i32, i32) {
    %c0_i32 = arith.constant 0 : i32
    %c0_i32_0 = arith.constant 0 : i32
    return %arg0, %c0_i32 : i32, i32
  }
  func.func @transform_2(%arg0: i32) -> (i32, i32) {
    %c0_i32 = arith.constant 0 : i32
    %c0_i32_0 = arith.constant 0 : i32
    %c0_i32_1 = arith.constant 0 : i32
    return %c0_i32, %c0_i32_0 : i32, i32
  }
  func.func @transform_3(%arg0: i32) -> (i32, i32) {
    %c0_i32 = arith.constant 0 : i32
    %c0_i32_0 = arith.constant 0 : i32
    %c0_i32_1 = arith.constant 0 : i32
    return %c0_i32, %c0_i32_0 : i32, i32
  }
  func.func @transform_4(%arg0: i32) -> (i32, i32) {
    %c0_i32 = arith.constant 0 : i32
    %c0_i32_0 = arith.constant 0 : i32
    return %arg0, %c0_i32 : i32, i32
  }
}

module attributes {stable_mosaic.version = 11 : i64} {
  func.func @_linear_kernel(%arg0: i32, %arg1: i32, %arg2: i32, %arg3: memref<16x64xf32, #tpu.memory_space<vmem>>, %arg4: memref<64x32xf32, #tpu.memory_space<vmem>>, %arg5: memref<1x32xf32, #tpu.memory_space<vmem>>, %arg6: memref<16x32xf32, #tpu.memory_space<vmem>>, %arg7: memref<16x32xf32, #tpu.memory_space<vmem>>) attributes {dimension_semantics = [#tpu.dimension_semantics<parallel>, #tpu.dimension_semantics<parallel>, #tpu.dimension_semantics<arbitrary>], iteration_bounds = array<i64: 1, 1, 1>, scalar_prefetch = 0 : i64, scratch_operands = 1 : i64, tpu.core_type = #tpu.core_type<tc>, window_params = [{transform_indices = @transform_0, window_bounds = array<i64: 16, 64>}, {transform_indices = @transform_1, window_bounds = array<i64: 64, 32>}, {transform_indices = @transform_2, window_bounds = array<i64: 1, 32>}, {transform_indices = @transform_3, window_bounds = array<i64: 16, 32>}]} {
    %c0_i32 = arith.constant 0 : i32
    %0 = arith.cmpi eq, %arg2, %c0_i32 : i32
    %1 = arith.extui %0 : i1 to i32
    %c0_i32_0 = arith.constant 0 : i32
    %2 = arith.cmpi ne, %1, %c0_i32_0 : i32
    scf.if %2 {
      %cst_10 = arith.constant 0.000000e+00 : f32
      %12 = vector.broadcast %cst_10 : f32 to vector<16x32xf32>
      %c0_11 = arith.constant 0 : index
      %c0_12 = arith.constant 0 : index
      %13 = vector.load %arg7[%c0_11, %c0_12] : memref<16x32xf32, #tpu.memory_space<vmem>>, vector<16x32xf32>
      tpu.vector_store %arg7[%c0_11, %c0_12], %12 {strides = array<i32>} : memref<16x32xf32, #tpu.memory_space<vmem>>, vector<16x32xf32>,
    } else {
    }
    %c0 = arith.constant 0 : index
    %c0_1 = arith.constant 0 : index
    %3 = vector.load %arg7[%c0, %c0_1] : memref<16x32xf32, #tpu.memory_space<vmem>>, vector<16x32xf32>
    %c0_2 = arith.constant 0 : index
    %c0_3 = arith.constant 0 : index
    %4 = vector.load %arg3[%c0_2, %c0_3] : memref<16x64xf32, #tpu.memory_space<vmem>>, vector<16x64xf32>
    %c0_4 = arith.constant 0 : index
    %c0_5 = arith.constant 0 : index
    %5 = vector.load %arg4[%c0_4, %c0_5] : memref<64x32xf32, #tpu.memory_space<vmem>>, vector<64x32xf32>
    %cst = arith.constant dense<0.000000e+00> : vector<16x32xf32>
    %6 = tpu.matmul %4, %5, %cst {dimension_numbers = #tpu.dot_dimension_numbers<[1], [0], [0], [1], [0, 0, 1, 1], [], []>} : vector<16x64xf32>, vector<64x32xf32>, vector<16x32xf32> -> vector<16x32xf32>
    %7 = arith.addf %3, %6 : vector<16x32xf32>
    %c0_6 = arith.constant 0 : index
    %c0_7 = arith.constant 0 : index
    %8 = vector.load %arg7[%c0_6, %c0_7] : memref<16x32xf32, #tpu.memory_space<vmem>>, vector<16x32xf32>
    tpu.vector_store %arg7[%c0_6, %c0_7], %7 {strides = array<i32>} : memref<16x32xf32, #tpu.memory_space<vmem>>, vector<16x32xf32>,
    %c0_i32_8 = arith.constant 0 : i32
    %9 = arith.cmpi eq, %arg2, %c0_i32_8 : i32
    %10 = arith.extui %9 : i1 to i32
    %c0_i32_9 = arith.constant 0 : i32
    %11 = arith.cmpi ne, %10, %c0_i32_9 : i32
    scf.if %11 {
      %c0_10 = arith.constant 0 : index
      %c0_11 = arith.constant 0 : index
      %12 = vector.load %arg7[%c0_10, %c0_11] : memref<16x32xf32, #tpu.memory_space<vmem>>, vector<16x32xf32>
      %c0_12 = arith.constant 0 : index
      %c0_13 = arith.constant 0 : index
      %13 = vector.load %arg5[%c0_12, %c0_13] : memref<1x32xf32, #tpu.memory_space<vmem>>, vector<1x32xf32>
      %14 = vector.broadcast %13 : vector<1x32xf32> to vector<16x32xf32>
      %15 = arith.addf %12, %14 : vector<16x32xf32>
      %c0_14 = arith.constant 0 : index
      %c0_15 = arith.constant 0 : index
      %16 = vector.load %arg6[%c0_14, %c0_15] : memref<16x32xf32, #tpu.memory_space<vmem>>, vector<16x32xf32>
      tpu.vector_store %arg6[%c0_14, %c0_15], %15 {strides = array<i32>} : memref<16x32xf32, #tpu.memory_space<vmem>>, vector<16x32xf32>,
    } else {
    }
    return
  }
  func.func @transform_0(%arg0: i32, %arg1: i32, %arg2: i32) -> (i32, i32) {
    %c0_i32 = arith.constant 0 : i32
    return %arg0, %arg2 : i32, i32
  }
  func.func @transform_1(%arg0: i32, %arg1: i32, %arg2: i32) -> (i32, i32) {
    %c0_i32 = arith.constant 0 : i32
    return %arg2, %arg1 : i32, i32
  }
  func.func @transform_2(%arg0: i32, %arg1: i32, %arg2: i32) -> (i32, i32) {
    %c0_i32 = arith.constant 0 : i32
    %c0_i32_0 = arith.constant 0 : i32
    return %c0_i32, %arg1 : i32, i32
  }
  func.func @transform_3(%arg0: i32, %arg1: i32, %arg2: i32) -> (i32, i32) {
    %c0_i32 = arith.constant 0 : i32
    return %arg0, %arg1 : i32, i32
  }
}

</mosaic_0001>

<bundles_post_ra>
// kernel: decoder_forward.31
= control target key start
LH: loop header
LB: loop body
LE: loop exit
PB: predicated region body
PF: predicated region fallthrough
CT: control target
= control target key end

     0   :  { %vm18_vm0 = vcmask 261120   ;;  %v156_v2 = vmov 0.0   ;;  %s212_s1 = inlined_call_operand.vmem [shape: f32[32,32], index: 1, kind: input, shape index: {}]   ;;  %s213_s0 = inlined_call_operand.vmem [shape: f32[16,32], index: 0, kind: input, shape index: {}]   ;;  %s214_s2 = inlined_call_operand.vmem [shape: f32[1,32], index: 2, kind: input, shape index: {}]   ;;  %s215_s3 = inlined_call_operand.vmem [shape: f32[16,32], index: 3, kind: output, shape index: {}]  }
   0x1   :  { %v28_v0 = vld [vmem:[%s212_s1 + $0x18] sm:$0xff]  ;;  %v27_v1 = vld [vmem:[%s212_s1 + $0x10] sm:$0xff]  ;;  %20 = vst.msk [vmem:[#allocation2 + $0x8] sm:$0xff] %vm18_vm0, %v156_v2  ;;  %19 = vst.msk [vmem:[#allocation2] sm:$0xff] %vm18_vm0, %v156_v2 }
   0x2   :  { %144 = vmatprep.subr.mxu0 %v28_v0  ;;  %v23_v3 = vld [vmem:[%s213_s0] sm:$0xff]  ;;  %v26_v4 = vld [vmem:[%s212_s1 + $0x8] sm:$0xff] }
   0x3   :  { %145 = vmatpush3.msra.mxu0 %v28_v0  ;;  %152 = vmatprep.mubr.msk.f32.mxu0 %vm18_vm0, %v23_v3  ;;  %v25_v5 = vld [vmem:[%s212_s1] sm:$0xff]  ;;  %v24_v6 = vld [vmem:[%s213_s0 + $0x8] sm:$0xff] }
   0x4   :  { %146 = vmatprep.subr.mxu0 %v27_v1  ;;  %v137_v13 = vld [vmem:[%s214_s2] ss:$0 sm:$0xff] }
   0x5   :  { %147 = vmatpush3.msra.mxu0 %v27_v1 }
   0x6   :  { %148 = vmatprep.subr.mxu0 %v26_v4 }
   0x7   :  { %149 = vmatpush3.msra.mxu0 %v26_v4 }
   0x8   :  { %150 = vmatprep.subr.mxu0 %v25_v5  ;;  %v22_v7 = vld [vmem:[#allocation2 + $0x8] sm:$0xff]  ;;  %v21_v9 = vld [vmem:[#allocation2] sm:$0xff] }
   0x9   :  { %151 = vmatpush3.msra.mxu0 %v25_v5 }
   0xa   :  { %153 = vmatmul.mubr.msk.f32.vlgmr.msra.gmra.mxu0 %vm18_vm0, %v24_v6 }
  0xca   :  { %v154_v8 = vpop.f32.mrf.mxu0 }
  0xcb   :  { %v112_v10 = vadd.f32 %v154_v8, %v22_v7 }
  0xcc   :  { %v102_v11 = vpop.f32.mrf.mxu0 }
  0xcd   :  { %114 = vst.msk [vmem:[#allocation2 + $0x8] sm:$0xff] %vm18_vm0, %v112_v10  ;;  %v111_v12 = vadd.f32 %v102_v11, %v21_v9 }
  0xcf   :  { %113 = vst.msk [vmem:[#allocation2] sm:$0xff] %vm18_vm0, %v111_v12 }
  0xd4   :  { %v119_v14 = vld [vmem:[#allocation2 + $0x8] sm:$0xff] }
  0xd5   :  { %v128_v15 = vadd.f32 %v137_v13, %v119_v14 }
  0xd6   :  { %v118_v16 = vld [vmem:[#allocation2] sm:$0xff] }
  0xd7   :  { %130 = vst.msk [vmem:[%s215_s3 + $0x8] sm:$0xff] %vm18_vm0, %v128_v15  ;;  %v127_v17 = vadd.f32 %v137_v13, %v118_v16 }
  0xd9   :  { %129 = vst.msk [vmem:[%s215_s3] sm:$0xff] %vm18_vm0, %v127_v17 }

// kernel: decoder_forward.35
= control target key start
LH: loop header
LB: loop body
LE: loop exit
PB: predicated region body
PF: predicated region fallthrough
CT: control target
= control target key end

     0   :  { %vm23_vm0 = vcmask 261120   ;;  %s139_s0 = inlined_call_operand.vmem [shape: f32[16,32], index: 0, kind: input, shape index: {}]   ;;  %s140_s1 = inlined_call_operand.vmem [shape: f32[16,32], index: 1, kind: input, shape index: {}]   ;;  %s141_s2 = inlined_call_operand.vmem [shape: f32[1,32], index: 2, kind: input, shape index: {}]   ;;  %s142_s3 = inlined_call_operand.vmem [shape: f32[1,32], index: 3, kind: input, shape index: {}]   ;;  %s143_s4 = inlined_call_operand.vmem [shape: f32[16,32], index: 4, kind: output, shape index: {}]  }
   0x1   :  { %v17_v0 = vld [vmem:[%s139_s0] sm:$0xff]  ;;  %v18_v2 = vld [vmem:[%s139_s0 + $0x8] sm:$0xff] }
   0x2   :  { %v19_v1 = vld [vmem:[%s140_s1] sm:$0xff]  ;;  %v20_v4 = vld [vmem:[%s140_s1 + $0x8] sm:$0xff] }
   0x3   :  { %v21_v3 = vadd.f32 %v19_v1, %v17_v0  ;;  %v22_v5 = vadd.f32 %v20_v4, %v18_v2  ;;  %v78_v28 = vld [vmem:[%s141_s2] ss:$0 sm:$0xff] }
   0x4   :  { %v79_v30 = vld [vmem:[%s142_s3] ss:$0 sm:$0xff] }
   0x5   :  { %v24_v6 = vsel %vm23_vm0, %v21_v3, 0.0  ;;  %v32_v7 = vmul.f32 %v21_v3, %v21_v3  ;;  %v33_v8 = vmul.f32 %v22_v5, %v22_v5  ;;  %v27_v10 = vsel %vm23_vm0, %v22_v5, 0.0 }
   0x6   :  { %25 = vadd.xlane.f32.xlu0 %v24_v6 }
   0x7   :  { %v34_v9 = vsel %vm23_vm0, %v32_v7, 0.0  ;;  %v37_v11 = vsel %vm23_vm0, %v33_v8, 0.0 }
   0x8   :  { %35 = vadd.xlane.f32.xlu1 %v34_v9 }
   0xa   :  { %28 = vadd.xlane.f32.xlu0 %v27_v10 }
   0xc   :  { %38 = vadd.xlane.f32.xlu1 %v37_v11 }
  0x8f   :  { %v26_v12 = vpop.xlane.xlu0 %25 }
  0x90   :  { %v30_v13 = vmul.f32 0.03125, %v26_v12 }
  0x91   :  { %v36_v14 = vpop.xlane.xlu1 %35 }
  0x92   :  { %v42_v15 = vmul.f32 %v30_v13, %v30_v13  ;;  %v40_v16 = vmul.f32 0.03125, %v36_v14  ;;  %v64_v26 = vsub.f32 %v21_v3, %v30_v13 }
  0x93   :  { %v29_v17 = vpop.xlane.xlu0 %28 }
  0x94   :  { %v44_v18 = vsub.f32 %v40_v16, %v42_v15  ;;  %v31_v19 = vmul.f32 0.03125, %v29_v17 }
  0x95   :  { %v39_v20 = vpop.xlane.xlu1 %38 }
  0x96   :  { %v46_v21 = vadd.f32 1e-05, %v44_v18  ;;  %v43_v22 = vmul.f32 %v31_v19, %v31_v19  ;;  %v41_v23 = vmul.f32 0.03125, %v39_v20  ;;  %v65_v32 = vsub.f32 %v22_v5, %v31_v19 }
  0x98   :  { %80 = vrsqrt.f32 %v46_v21  ;;  %v45_v24 = vsub.f32 %v41_v23, %v43_v22 }
  0x9a   :  { %v47_v25 = vadd.f32 1e-05, %v45_v24 }
  0x9c   :  { %82 = vrsqrt.f32 %v47_v25 }
  0xa5   :  { %v81_v27 = vpop.eup %80 }
  0xa6   :  { %v66_v29 = vmul.f32 %v81_v27, %v64_v26 }
  0xa8   :  { %v68_v31 = vmul.f32 %v78_v28, %v66_v29 }
  0xa9   :  { %v83_v33 = vpop.eup %82 }
  0xaa   :  { %v70_v34 = vadd.f32 %v79_v30, %v68_v31  ;;  %v67_v35 = vmul.f32 %v83_v33, %v65_v32 }
  0xac   :  { %72 = vst.msk [vmem:[%s143_s4] sm:$0xff] %vm23_vm0, %v70_v34  ;;  %v69_v36 = vmul.f32 %v78_v28, %v67_v35 }
  0xae   :  { %v71_v37 = vadd.f32 %v79_v30, %v69_v36 }
  0xb0   :  { %73 = vst.msk [vmem:[%s143_s4 + $0x8] sm:$0xff] %vm23_vm0, %v71_v37 }

// kernel: decoder_forward.33
= control target key start
LH: loop header
LB: loop body
LE: loop exit
PB: predicated region body
PF: predicated region fallthrough
CT: control target
= control target key end

     0   :  { %s829_s18 = smov 0   ;;  %s831_s19 = smov 0   ;;  %s904_s0 = inlined_call_operand.vmem [shape: f32[2,4,8,8], index: 0, kind: input, shape index: {}]   ;;  %s905_s1 = inlined_call_operand.vmem [shape: f32[2,4,8,8], index: 1, kind: input, shape index: {}]   ;;  %s906_s2 = inlined_call_operand.vmem [shape: f32[2,4,8,8], index: 2, kind: input, shape index: {}]   ;;  %s907_s3 = inlined_call_operand.vmem [shape: f32[2,8,8], index: 3, kind: input, shape index: {}]   ;;  %s908_s4 = inlined_call_operand.vmem [shape: f32[2,8,1], index: 4, kind: input, shape index: {}]   ;;  %s909_s5 = inlined_call_operand.vmem [shape: f32[2,4,8,8], index: 5, kind: output, shape index: {}]  }
   0x1   :  { %s833_s20 = smov 0   ;;  %s835_s21 = smov 0  }
   0x2   :  { %s837_s22 = smov 0  }
   0x3 LB: > { %s24_s23 = sadd.s32 1, %s786_s20  ;;  %s27_s24 = sadd.s32 1, %s790_s21  ;;  %s794_s22 = sphi %s837_s22, %s15_s22   ;;  %s790_s21 = sphi %s835_s21, %s913_s21   ;;  %s786_s20 = sphi %s833_s20, %s912_s20   ;;  %s782_s19 = sphi %s831_s19, %s911_s19   ;;  %s778_s18 = sphi %s829_s18, %s910_s18  }
   0x4   : > { %p25_p0 = scmp.ge.s32.totalorder %s24_s23, 4  ;;  %p677_p1 = scmp.ge.s32.totalorder %s794_s22, 1 }
   0x5   : > { %p254_p2 = scmp.lt.s32.totalorder %s794_s22, 9 }
   0x6   : > { %s915_s23 = smov (%p25_p0, %s24_s23), 0  ;;  %s917_s24 = smov (!%p25_p0, %s27_s24), %s790_s21 }
   0x7   : > { %p255_p3 = pnand %p677_p1, %p254_p2  ;;  %p29_p4 = scmp.ge.s32.totalorder %s917_s24, 2 }
   0x8   : > { %p312_p5 = scmp.lt.s32.totalorder (!%p255_p3), %s782_s19, 1  ;;  %p314_p6 = scmp.lt.s32.totalorder (!%p255_p3), %s778_s18, 3 }
   0x9   : > { %s919_s24 = smov (%p29_p4, %s917_s24), 0  ;;  %258 = sbr.rel (%p255_p3) target bundleno = 729 (0x2d9), region = 40 }
   0xe   : > { %v796_v0 = vmov 0.0   ;;  %vm797_vm0 = vmmov 0   ;;  %s921_s19 = smov (!%p312_p5, %s782_s19), 1  ;;  %s923_s18 = smov (!%p314_p6, %s778_s18), 3  ;;  %vm355_vm1 = vcmask 64512   ;;  %v798_v9 = vmov 0  }
   0xf   : > { %697 = vmatprep.subr.mxu0 %v796_v0  ;;  %699 = vmatprep.mubr.msk.f32.mxu0 %vm797_vm0, %v796_v0  ;;  %s678_s25 = sshll.u32 %s921_s19, 2  ;;  %s684_s9 = sshll.u32 %s921_s19, 3 }
  0x10   : > { %702 = vmatprep.subr.mxu1 %v796_v0  ;;  %704 = vmatprep.mubr.msk.f32.mxu1 %vm797_vm0, %v796_v0  ;;  %s317_s26 = sadd.s32 %s678_s25, %s923_s18  ;;  %s339_s12 = scalar_lea.vmem %s907_s3, %s684_s9 }
  0x11   : > { %s859_s27 = sshll.u32 %s317_s26, 3  ;;  %v433_v4 = vld [vmem:[%s339_s12] sm:$0xff]  ;;  %s343_s15 = scalar_lea.vmem %s908_s4, %s684_s9  ;;  %750 = vset.pattern.permute.xlu1 %v798_v9  ;;  %751 = vset.pattern.permute.xlu0 %v798_v9 }
  0x12   : > { %s327_s30 = scalar_lea.vmem %s905_s1, %s859_s27  ;;  %s319_s8 = scalar_lea.vmem %s904_s0, %s859_s27  ;;  %v446_v10 = vld [vmem:[%s343_s15] sm:$0xff] }
  0x13   : > { %v353_v1 = vld [vmem:[%s327_s30] sm:$0xff]  ;;  %449 = vperm.xlu1 %750, %v446_v10   ;;  %s335_s18 = scalar_lea.vmem %s906_s2, %s859_s27  ;;  %s351_s26 = scalar_lea.vmem %s909_s5, %s859_s27 }
  0x14   : > { %698 = vmatpush3.xpose.msk.msra.mxu0 %vm355_vm1, %v353_v1  ;;  %v352_v2 = vld [vmem:[%s319_s8] sm:$0xff] }
  0x15   : > { %v354_v16 = vld [vmem:[%s335_s18] sm:$0xff] }
  0x16   : > { %703 = vmatpush3.msra.mxu1 %v354_v16 }
  0x17   : > { %700 = vmatmul.mubr.msk.f32.vlgmr.msra.gmra.mxu0 %vm355_vm1, %v352_v2 }
  0x8e   : > { %v450_v19 = vpop.permute.xlu1 %449 }
  0xd7   : > { %v428_v3 = vpop.f32.mrf.mxu0 }
  0xd8   : > { %v432_v5 = vmul.f32 0.35355338, %v428_v3 }
  0xd9   : > { %v701_v6 = vpop.f32.mrf.mxu0 }
  0xda   : > { %v434_v7 = vadd.f32 %v433_v4, %v432_v5 }
  0xdc   : > { %v435_v8 = vsel %vm355_vm1, %v434_v7, -inf }
  0xdd   : > { %436 = vmax.xlane.f32.xlu0 %v435_v8 }
 0x166   : > { %v437_v11 = vpop.xlane.xlu0 %436 }
 0x167   : > { %v438_v12 = vsub.f32 %v434_v7, %v437_v11 }
 0x169   : > { %v439_v13 = vmul.f32 1.442695, %v438_v12 }
 0x16b   : > { %752 = vpow2.f32 %v439_v13 }
 0x178   : > { %v753_v14 = vpop.eup %752 }
 0x179   : > { %v441_v15 = vsel %vm355_vm1, %v753_v14, 0.0 }
 0x17a   : > { %442 = vadd.xlane.f32.xlu0 %v441_v15 }
 0x203   : > { %v443_v17 = vpop.xlane.xlu0 %442 }
 0x204   : > { %754 = vrcp.f32 %v443_v17 }
 0x211   : > { %v755_v18 = vpop.eup %754 }
 0x212   : > { %v445_v20 = vmul.f32 %v755_v18, %v753_v14 }
 0x214   : > { %v452_v21 = vmul.f32 %v450_v19, %v445_v20 }
 0x216   : > { %705 = vmatmul.mubr.msk.f32.vlgmr.msra.gmra.mxu1 %vm355_vm1, %v452_v21 }
 0x2d6   : > { %v522_v22 = vpop.f32.mrf.mxu1 }
 0x2d7   : > { %526 = vst.msk [vmem:[%s351_s26] sm:$0xff] %vm355_vm1, %v522_v22 }
 0x2d8   : > { %v706_v23 = vpop.f32.mrf.mxu1 }
 0x2d9 PF: > { %s15_s22 = sadd.s32 1, %s794_s22   ;;  %s910_s18 = smov %s786_s20 }
 0x2da   : > { %p12_p7 = scmp.ge.s32.totalorder %s15_s22, 10   ;;  %s911_s19 = smov %s790_s21 }
 0x2db   : > { %s912_s20 = smov %s915_s23  ;;  %s913_s21 = smov %s919_s24 }
 0x2dc   :  { %14 = sbr.rel (!%p12_p7) target bundleno = 3 (0x3), region = 82 }

// kernel: decoder_forward.42
= control target key start
LH: loop header
LB: loop body
LE: loop exit
PB: predicated region body
PF: predicated region fallthrough
CT: control target
= control target key end

     0   :  { %vm29_vm0 = vcmask 261120   ;;  %vm18_vm1 = vcmask 523264   ;;  %v159_v2 = vmov 0.0   ;;  %s215_s1 = inlined_call_operand.vmem [shape: f32[32,64], index: 1, kind: input, shape index: {}]   ;;  %s216_s0 = inlined_call_operand.vmem [shape: f32[16,32], index: 0, kind: input, shape index: {}]   ;;  %s217_s2 = inlined_call_operand.vmem [shape: f32[1,64], index: 2, kind: input, shape index: {}]   ;;  %s218_s3 = inlined_call_operand.vmem [shape: f32[16,64], index: 3, kind: output, shape index: {}]  }
   0x1   :  { %v28_v0 = vld [vmem:[%s215_s1 + $0x18] sm:$0xff]  ;;  %v27_v1 = vld [vmem:[%s215_s1 + $0x10] sm:$0xff]  ;;  %20 = vst.msk [vmem:[#allocation2 + $0x8] sm:$0xff] %vm18_vm1, %v159_v2  ;;  %19 = vst.msk [vmem:[#allocation2] sm:$0xff] %vm18_vm1, %v159_v2 }
   0x2   :  { %147 = vmatprep.subr.mxu0 %v28_v0  ;;  %v23_v3 = vld [vmem:[%s216_s0] sm:$0xff]  ;;  %v26_v4 = vld [vmem:[%s215_s1 + $0x8] sm:$0xff] }
   0x3   :  { %148 = vmatpush3.msra.mxu0 %v28_v0  ;;  %155 = vmatprep.mubr.msk.f32.mxu0 %vm29_vm0, %v23_v3  ;;  %v25_v5 = vld [vmem:[%s215_s1] sm:$0xff]  ;;  %v24_v6 = vld [vmem:[%s216_s0 + $0x8] sm:$0xff] }
   0x4   :  { %149 = vmatprep.subr.mxu0 %v27_v1  ;;  %v140_v13 = vld [vmem:[%s217_s2] ss:$0 sm:$0xff] }
   0x5   :  { %150 = vmatpush3.msra.mxu0 %v27_v1 }
   0x6   :  { %151 = vmatprep.subr.mxu0 %v26_v4 }
   0x7   :  { %152 = vmatpush3.msra.mxu0 %v26_v4 }
   0x8   :  { %153 = vmatprep.subr.mxu0 %v25_v5  ;;  %v22_v7 = vld [vmem:[#allocation2 + $0x8] sm:$0xff]  ;;  %v21_v9 = vld [vmem:[#allocation2] sm:$0xff] }
   0x9   :  { %154 = vmatpush3.msra.mxu0 %v25_v5 }
   0xa   :  { %156 = vmatmul.mubr.msk.f32.vlgmr.msra.gmra.mxu0 %vm29_vm0, %v24_v6 }
  0xca   :  { %v157_v8 = vpop.f32.mrf.mxu0 }
  0xcb   :  { %v112_v10 = vadd.f32 %v157_v8, %v22_v7 }
  0xcc   :  { %v102_v11 = vpop.f32.mrf.mxu0 }
  0xcd   :  { %115 = vst.msk [vmem:[#allocation2 + $0x8] sm:$0xff] %vm18_vm1, %v112_v10  ;;  %v111_v12 = vadd.f32 %v102_v11, %v21_v9 }
  0xcf   :  { %114 = vst.msk [vmem:[#allocation2] sm:$0xff] %vm18_vm1, %v111_v12 }
  0xd4   :  { %v120_v14 = vld [vmem:[#allocation2 + $0x8] sm:$0xff] }
  0xd5   :  { %v129_v15 = vadd.f32 %v140_v13, %v120_v14 }
  0xd6   :  { %v119_v16 = vld [vmem:[#allocation2] sm:$0xff] }
  0xd7   :  { %v131_v17 = vmax.f32 %v129_v15, 0.0  ;;  %v128_v18 = vadd.f32 %v140_v13, %v119_v16 }
  0xd9   :  { %133 = vst.msk [vmem:[%s218_s3 + $0x8] sm:$0xff] %vm18_vm1, %v131_v17  ;;  %v130_v19 = vmax.f32 %v128_v18, 0.0 }
  0xdb   :  { %132 = vst.msk [vmem:[%s218_s3] sm:$0xff] %vm18_vm1, %v130_v19 }

// kernel: decoder_forward.59
= control target key start
LH: loop header
LB: loop body
LE: loop exit
PB: predicated region body
PF: predicated region fallthrough
CT: control target
= control target key end

     0   :  { %vm24_vm0 = vcmask 261120   ;;  %s177_s0 = inlined_call_operand.vmem [shape: f32[16,32], index: 0, kind: input, shape index: {}]   ;;  %s178_s1 = inlined_call_operand.vmem [shape: f32[16,32], index: 1, kind: input, shape index: {}]   ;;  %s179_s2 = inlined_call_operand.vmem [shape: f32[1,32], index: 2, kind: input, shape index: {}]   ;;  %s180_s3 = inlined_call_operand.vmem [shape: f32[1,32], index: 3, kind: input, shape index: {}]   ;;  %s181_s4 = inlined_call_operand.hbm [shape: f32[16,32], index: 4, kind: output, shape index: {}]  }
   0x1   :  { %v18_v0 = vld [vmem:[%s177_s0] sm:$0xff]  ;;  %v19_v2 = vld [vmem:[%s177_s0 + $0x8] sm:$0xff] }
   0x2   :  { %v20_v1 = vld [vmem:[%s178_s1] sm:$0xff]  ;;  %v21_v4 = vld [vmem:[%s178_s1 + $0x8] sm:$0xff] }
   0x3   :  { %v22_v3 = vadd.f32 %v20_v1, %v18_v0 }
   0x4   :  { %9 = vsyncpa [#allocation3], 0  ;;  %v23_v5 = vadd.f32 %v21_v4, %v19_v2  ;;  %v91_v28 = vld [vmem:[%s179_s2] ss:$0 sm:$0xff]  ;;  %s122_s25 = smov [#allocation2]  }
   0x5   :  { %v25_v6 = vsel %vm24_vm0, %v22_v3, 0.0  ;;  %v33_v7 = vmul.f32 %v22_v3, %v22_v3  ;;  %v92_v30 = vld [vmem:[%s180_s3] ss:$0 sm:$0xff]  ;;  %s80_s26 = sshll.u32 %s122_s25, 4  ;;  %s81_s26 = int_to_ptr.vmem [resolvable:$true] %s80_s26 }
   0x6   :  { %26 = vadd.xlane.f32.xlu0 %v25_v6  ;;  %v34_v8 = vmul.f32 %v23_v5, %v23_v5  ;;  %v28_v10 = vsel %vm24_vm0, %v23_v5, 0.0  ;;  %s100_s2 = scalar_lea.vmem %s81_s26, 256  ;;  %p105_p1 = scmp.lt.s32.totalorder %s81_s26, %s81_s26 }
   0x7   :  { %v35_v9 = vsel %vm24_vm0, %v33_v7, 0.0  ;;  %p101_p0 = scmp.ne.s32.totalorder %s81_s26, %s100_s2  ;;  %p106_p2 = scmp.lt.s32.totalorder %s100_s2, %s100_s2 }
   0x8   :  { %36 = vadd.xlane.f32.xlu1 %v35_v9  ;;  %v38_v11 = vsel %vm24_vm0, %v34_v8, 0.0 }
   0x9   :  { %p107_p3 = por %p106_p2, %p105_p1 }
   0xa   :  { %29 = vadd.xlane.f32.xlu0 %v28_v10 }
   0xb   :  { %p108_p4 = pnand %p107_p3, %p101_p0 }
   0xc   :  { %39 = vadd.xlane.f32.xlu1 %v38_v11 }
  0x8f   :  { %v27_v12 = vpop.xlane.xlu0 %26 }
  0x90   :  { %v31_v13 = vmul.f32 0.03125, %v27_v12 }
  0x91   :  { %v37_v14 = vpop.xlane.xlu1 %36 }
  0x92   :  { %v43_v15 = vmul.f32 %v31_v13, %v31_v13  ;;  %v41_v16 = vmul.f32 0.03125, %v37_v14  ;;  %v65_v26 = vsub.f32 %v22_v3, %v31_v13 }
  0x93   :  { %v30_v17 = vpop.xlane.xlu0 %29 }
  0x94   :  { %v45_v18 = vsub.f32 %v41_v16, %v43_v15  ;;  %v32_v19 = vmul.f32 0.03125, %v30_v17 }
  0x95   :  { %v40_v20 = vpop.xlane.xlu1 %39 }
  0x96   :  { %v47_v21 = vadd.f32 1e-05, %v45_v18  ;;  %v44_v22 = vmul.f32 %v32_v19, %v32_v19  ;;  %v42_v23 = vmul.f32 0.03125, %v40_v20  ;;  %v66_v31 = vsub.f32 %v23_v5, %v32_v19 }
  0x98   :  { %96 = vrsqrt.f32 %v47_v21  ;;  %v46_v24 = vsub.f32 %v42_v23, %v44_v22 }
  0x9a   :  { %v48_v25 = vadd.f32 1e-05, %v46_v24 }
  0x9c   :  { %98 = vrsqrt.f32 %v48_v25 }
  0xa5   :  { %v97_v27 = vpop.eup %96 }
  0xa6   :  { %v67_v29 = vmul.f32 %v97_v27, %v65_v26 }
  0xa8   :  { %v69_v32 = vmul.f32 %v91_v28, %v67_v29 }
  0xa9   :  { %v99_v33 = vpop.eup %98 }
  0xaa   :  { %v68_v34 = vmul.f32 %v99_v33, %v66_v31  ;;  %v71_v35 = vadd.f32 %v92_v30, %v69_v32 }
  0xac   :  { %v70_v36 = vmul.f32 %v91_v28, %v68_v34  ;;  %73 = vst.msk [vmem:[#allocation2] sm:$0xff] %vm24_vm0, %v71_v35 }
  0xae   :  { %v72_v37 = vadd.f32 %v92_v30, %v70_v36 }
  0xb0   :  { %74 = vst.msk [vmem:[#allocation2 + $0x8] sm:$0xff] %vm24_vm0, %v72_v37 }
  0xb1   :  { %111 = shalt.err (!%p108_p4)
}
  0xb2   :  { %s123_s3 = smov 128   ;;  %s124_s27 = smov 8  }
  0xb3   :  { %86 = dma.vmem_to_hbm [thread:$0]  %s81_s26, 256, %s181_s4, [#allocation3], %s123_s3, %s123_s3, %s124_s27  }
  0xb4   :  { %120 = dma.done.wait [#allocation3], 256  }
  0xb5   :  { %121 = vsyncadd [#allocation3], 4294967040 }
  0xb6   :  { %90 = vsyncpa [#allocation3], 1 }

// kernel: decoder_forward.43
= control target key start
LH: loop header
LB: loop body
LE: loop exit
PB: predicated region body
PF: predicated region fallthrough
CT: control target
= control target key end

     0   :  { %vm18_vm0 = vcmask 261120   ;;  %vm33_vm1 = vcmask 523264   ;;  %v173_v2 = vmov 0.0   ;;  %s241_s1 = inlined_call_operand.vmem [shape: f32[64,32], index: 1, kind: input, shape index: {}]   ;;  %s242_s0 = inlined_call_operand.vmem [shape: f32[16,64], index: 0, kind: input, shape index: {}]   ;;  %s243_s2 = inlined_call_operand.vmem [shape: f32[1,32], index: 2, kind: input, shape index: {}]   ;;  %s244_s3 = inlined_call_operand.vmem [shape: f32[16,32], index: 3, kind: output, shape index: {}]  }
   0x1   :  { %v32_v0 = vld [vmem:[%s241_s1 + $0x38] sm:$0xff]  ;;  %v31_v1 = vld [vmem:[%s241_s1 + $0x30] sm:$0xff]  ;;  %20 = vst.msk [vmem:[#allocation2 + $0x8] sm:$0xff] %vm18_vm0, %v173_v2  ;;  %19 = vst.msk [vmem:[#allocation2] sm:$0xff] %vm18_vm0, %v173_v2 }
   0x2   :  { %153 = vmatprep.subr.mxu0 %v32_v0  ;;  %v30_v3 = vld [vmem:[%s241_s1 + $0x28] sm:$0xff]  ;;  %v23_v4 = vld [vmem:[%s242_s0] sm:$0xff]  ;;  %v28_v6 = vld [vmem:[%s241_s1 + $0x18] sm:$0xff] }
   0x3   :  { %154 = vmatpush3.msra.mxu0 %v32_v0  ;;  %169 = vmatprep.mubr.msk.f32.mxu0 %vm33_vm1, %v23_v4  ;;  %v29_v5 = vld [vmem:[%s241_s1 + $0x20] sm:$0xff]  ;;  %v27_v7 = vld [vmem:[%s241_s1 + $0x10] sm:$0xff]  ;;  %v26_v8 = vld [vmem:[%s241_s1 + $0x8] sm:$0xff] }
   0x4   :  { %155 = vmatprep.subr.mxu0 %v31_v1  ;;  %v25_v9 = vld [vmem:[%s241_s1] sm:$0xff]  ;;  %v24_v10 = vld [vmem:[%s242_s0 + $0x8] sm:$0xff] }
   0x5   :  { %156 = vmatpush3.msra.mxu0 %v31_v1  ;;  %v142_v17 = vld [vmem:[%s243_s2] ss:$0 sm:$0xff] }
   0x6   :  { %157 = vmatprep.subr.mxu0 %v30_v3 }
   0x7   :  { %158 = vmatpush3.msra.mxu0 %v30_v3 }
   0x8   :  { %159 = vmatprep.subr.mxu0 %v29_v5  ;;  %v22_v11 = vld [vmem:[#allocation2 + $0x8] sm:$0xff]  ;;  %v21_v13 = vld [vmem:[#allocation2] sm:$0xff] }
   0x9   :  { %160 = vmatpush3.msra.mxu0 %v29_v5 }
   0xa   :  { %161 = vmatprep.subr.mxu0 %v28_v6 }
   0xb   :  { %162 = vmatpush3.msra.mxu0 %v28_v6 }
   0xc   :  { %163 = vmatprep.subr.mxu0 %v27_v7 }
   0xd   :  { %164 = vmatpush3.msra.mxu0 %v27_v7 }
   0xe   :  { %165 = vmatprep.subr.mxu0 %v26_v8 }
   0xf   :  { %166 = vmatpush3.msra.mxu0 %v26_v8 }
  0x10   :  { %167 = vmatprep.subr.mxu0 %v25_v9 }
  0x11   :  { %168 = vmatpush3.msra.mxu0 %v25_v9 }
  0x12   :  { %170 = vmatmul.mubr.msk.f32.vlgmr.msra.gmra.mxu0 %vm33_vm1, %v24_v10 }
  0xd2   :  { %v171_v12 = vpop.f32.mrf.mxu0 }
  0xd3   :  { %v116_v14 = vadd.f32 %v171_v12, %v22_v11 }
  0xd4   :  { %v106_v15 = vpop.f32.mrf.mxu0 }
  0xd5   :  { %119 = vst.msk [vmem:[#allocation2 + $0x8] sm:$0xff] %vm18_vm0, %v116_v14  ;;  %v115_v16 = vadd.f32 %v106_v15, %v21_v13 }
  0xd7   :  { %118 = vst.msk [vmem:[#allocation2] sm:$0xff] %vm18_vm0, %v115_v16 }
  0xdc   :  { %v124_v18 = vld [vmem:[#allocation2 + $0x8] sm:$0xff] }
  0xdd   :  { %v133_v19 = vadd.f32 %v142_v17, %v124_v18 }
  0xde   :  { %v123_v20 = vld [vmem:[#allocation2] sm:$0xff] }
  0xdf   :  { %135 = vst.msk [vmem:[%s244_s3 + $0x8] sm:$0xff] %vm18_vm0, %v133_v19  ;;  %v132_v21 = vadd.f32 %v142_v17, %v123_v20 }
  0xe1   :  { %134 = vst.msk [vmem:[%s244_s3] sm:$0xff] %vm18_vm0, %v132_v21 }

</bundles_post_ra>
